<compile_context>
chip_gen: v5e
topology: v5e:2x2
jax: 0.10.0
libtpu: 0.0.40
codegen_flags: <defaults>
</compile_context>

<pallas_src>
import jax
import jax.numpy as jnp
import numpy as np
from jax.experimental import pallas as pl
from jax.experimental.pallas import tpu as pltpu


def rnn_decoder_kernel(x_ref, h0_ref, whh_ref, b_ref, wout_ref, bout_ref,
                       out_ref, state_ref,
                       h_scratch, y_scratch):
    """One grid step = Tt timesteps of the recurrence + one batched decode.

    x_ref     : (Tt, B, H)  f32   pre-gathered rows of W_ih^T (== one_hot @ W_ih^T)
    h0_ref    : (B, H)      f32   initial hidden state
    whh_ref   : (H, H)      bf16  W_hh^T
    b_ref     : (1, H)      f32   b_ih + b_hh
    wout_ref  : (H, Vp)     bf16  W_out^T, zero-padded to lane-dense Vp
    bout_ref  : (1, Vp)     f32   b_out, zero-padded
    out_ref   : (Tt*B, Vp)  f32   decoded logits for this time-block
    state_ref : (1, B, H)   f32   final hidden state (written on last grid step)
    h_scratch : (B, H)      f32   hidden-state carry across grid steps
    y_scratch : (Tt*B, H)   f32   per-block staging of hidden states for decode
    """
    g = pl.program_id(0)

    @pl.when(g == 0)
    def _():
        h_scratch[...] = h0_ref[...]

    tt, bsz, hid = x_ref.shape

    # Hoist loop-invariant reads / broadcasts out of the timestep loop.
    whh = whh_ref[...]                                    # (H, H) bf16
    b_rnn = jnp.broadcast_to(b_ref[...], (bsz, hid))      # (B, H) f32

    h = h_scratch[...]                                    # (B, H) f32
    # Static unrolled recurrence over the Tt local timesteps (Tt is small here;
    # for large Tt switch to lax.fori_loop over the y_scratch rows).
    for i in range(tt):
        x_t = x_ref[i]                                    # (B, H) f32, static index
        h = jnp.tanh(
            x_t + b_rnn
            + jnp.dot(h.astype(jnp.bfloat16), whh,
                      preferred_element_type=jnp.float32))
        # Row order i*B + b matches PyTorch's Y.reshape(-1, H) within the block.
        y_scratch[i * bsz:(i + 1) * bsz, :] = h
    h_scratch[...] = h

    # Fused decoder: ONE (Tt*B, H) x (H, Vp) matmul for the whole time-block,
    # lane-dense (Vp multiple of 128) unmasked writeback.
    out_ref[...] = (
        jnp.dot(y_scratch[...].astype(jnp.bfloat16), wout_ref[...],
                preferred_element_type=jnp.float32)
        + bout_ref[...])

    @pl.when(g == pl.num_programs(0) - 1)
    def _():
        state_ref[0] = h


def rnn_model_forward(inputs, state, params, vocab_size, num_hiddens, tt=None):
    """inputs: (B, T) int32 token ids; state: (1, B, H) f32.

    Returns (output, new_state) with output shape (T*B, vocab_size), matching
    the PyTorch RNNModel.forward contract.
    """
    B, T = inputs.shape
    H = num_hiddens
    V = vocab_size
    Vp = ((V + 127) // 128) * 128          # lane-dense decoder width (>=128)

    if tt is None:
        # Aim for >= 256 decoder rows per block (fills the MXU), capped at T.
        tt = max(1, min(T, -(-256 // B)))
    assert T % tt == 0, "num_steps must be divisible by the timestep block tt"
    assert (tt * B) % 8 == 0 or tt * B == T * B, \
        "tt*B must be a sublane multiple (8) for the output block"
    nT = T // tt

    # ---- glue / weight prep (wrapper-side, cheap) ----
    # one_hot(ids) @ W_ih^T  ==  row gather of W_ih^T  -> no one-hot, no matmul.
    wih_t = params["W_ih"].T.astype(jnp.float32)                     # (V, H)
    X_emb = jnp.take(wih_t, inputs.T, axis=0)                        # (T, B, H)
    h0 = state[0].astype(jnp.float32)                                # (B, H)
    whh_t = params["W_hh"].T.astype(jnp.bfloat16)                    # (H, H)
    b_rnn = (params["b_ih"] + params["b_hh"]).reshape(1, H).astype(jnp.float32)
    wout_t = jnp.pad(params["W_out"].T.astype(jnp.bfloat16),
                     ((0, 0), (0, Vp - V)))                          # (H, Vp)
    b_out = jnp.pad(params["b_out"].astype(jnp.float32),
                    (0, Vp - V)).reshape(1, Vp)                      # (1, Vp)

    out_p, new_state = pl.pallas_call(
        rnn_decoder_kernel,
        out_shape=(
            jax.ShapeDtypeStruct((T * B, Vp), jnp.float32),
            jax.ShapeDtypeStruct((1, B, H), jnp.float32),
        ),
        grid_spec=pltpu.PrefetchScalarGridSpec(
            num_scalar_prefetch=0,
            grid=(nT,),                                              # sequential over time-blocks
            in_specs=[
                pl.BlockSpec((tt, B, H), lambda g: (g, 0, 0)),       # X_emb block (streams)
                pl.BlockSpec((B, H), lambda g: (0, 0)),              # h0 (resident)
                pl.BlockSpec((H, H), lambda g: (0, 0)),              # W_hh^T (bf16, resident)
                pl.BlockSpec((1, H), lambda g: (0, 0)),              # b_ih + b_hh (resident)
                pl.BlockSpec((H, Vp), lambda g: (0, 0)),             # W_out^T (bf16, padded, resident)
                pl.BlockSpec((1, Vp), lambda g: (0, 0)),             # b_out (padded, resident)
            ],
            out_specs=[
                pl.BlockSpec((tt * B, Vp), lambda g: (g, 0)),        # logits block (lane-dense)
                pl.BlockSpec((1, B, H), lambda g: (0, 0, 0)),        # final state (resident)
            ],
            scratch_shapes=[
                pltpu.VMEM((B, H), jnp.float32),                     # hidden-state carry
                pltpu.VMEM((tt * B, H), jnp.float32),                # per-block Y staging
            ],
        ),
        compiler_params=pltpu.CompilerParams(
            dimension_semantics=("arbitrary",)),                     # sequential recurrence
    )(X_emb, h0, whh_t, b_rnn, wout_t, b_out)

    output = out_p[:, :V]                  # drop lane padding
    return output, new_state


def reference_forward(inputs, state, params, vocab_size, num_hiddens):
    """Pure-JAX reference with the same (bf16-weight, f32-accumulate) numerics."""
    wih_t = params["W_ih"].T.astype(jnp.float32)
    whh_t = params["W_hh"].T.astype(jnp.bfloat16)
    b_rnn = (params["b_ih"] + params["b_hh"]).astype(jnp.float32)
    wout_t = params["W_out"].T.astype(jnp.bfloat16)
    b_out = params["b_out"].astype(jnp.float32)

    X = jnp.take(wih_t, inputs.T, axis=0)                            # (T, B, H)
    h0 = state[0]

    def step(h, x_t):
        h_new = jnp.tanh(
            x_t + b_rnn
            + jnp.dot(h.astype(jnp.bfloat16), whh_t,
                      preferred_element_type=jnp.float32))
        return h_new, h_new

    h_last, Y = jax.lax.scan(step, h0, X)                            # Y: (T, B, H)
    out = (jnp.dot(Y.reshape(-1, num_hiddens).astype(jnp.bfloat16), wout_t,
                   preferred_element_type=jnp.float32) + b_out)
    return out, h_last[None]


if __name__ == "__main__":
    vocab_size = 32
    num_hiddens = 32
    batch = 2
    num_steps = 8

    key = jax.random.PRNGKey(0)
    k = jax.random.split(key, 7)
    bound = 1.0 / np.sqrt(num_hiddens)
    params = {
        "W_ih": jax.random.uniform(k[0], (num_hiddens, vocab_size),
                                   jnp.float32, -bound, bound),
        "W_hh": jax.random.uniform(k[1], (num_hiddens, num_hiddens),
                                   jnp.float32, -bound, bound),
        "b_ih": jax.random.uniform(k[2], (num_hiddens,),
                                   jnp.float32, -bound, bound),
        "b_hh": jax.random.uniform(k[3], (num_hiddens,),
                                   jnp.float32, -bound, bound),
        "W_out": jax.random.uniform(k[4], (vocab_size, num_hiddens),
                                    jnp.float32, -bound, bound),
        "b_out": jax.random.uniform(k[5], (vocab_size,),
                                    jnp.float32, -bound, bound),
    }

    inputs = jax.random.randint(k[6], (batch, num_steps), 0, vocab_size,
                                dtype=jnp.int32)
    state = jnp.zeros((1, batch, num_hiddens), jnp.float32)  # begin_state()

    # tt=4 -> 2 time-blocks, so the hidden-state carry across grid steps is exercised.
    out, new_state = rnn_model_forward(inputs, state, params,
                                       vocab_size, num_hiddens, tt=4)
    jax.block_until_ready((out, new_state))

    ref_out, ref_state = reference_forward(inputs, state, params,
                                           vocab_size, num_hiddens)
    np.testing.assert_allclose(np.asarray(out), np.asarray(ref_out),
                               rtol=1e-4, atol=1e-4)
    np.testing.assert_allclose(np.asarray(new_state), np.asarray(ref_state),
                               rtol=1e-4, atol=1e-4)

    print("KERNEL_OK")
</pallas_src>

<mosaic_0001>
module attributes {stable_mosaic.version = 11 : i64} {
  func.func @rnn_decoder_kernel(%arg0: i32, %arg1: memref<4x2x32xf32, #tpu.memory_space<vmem>>, %arg2: memref<2x32xf32, #tpu.memory_space<vmem>>, %arg3: memref<32x32xbf16, #tpu.memory_space<vmem>>, %arg4: memref<1x32xf32, #tpu.memory_space<vmem>>, %arg5: memref<32x128xbf16, #tpu.memory_space<vmem>>, %arg6: memref<1x128xf32, #tpu.memory_space<vmem>>, %arg7: memref<8x128xf32, #tpu.memory_space<vmem>>, %arg8: memref<1x2x32xf32, #tpu.memory_space<vmem>>, %arg9: memref<2x32xf32, #tpu.memory_space<vmem>>, %arg10: memref<8x32xf32, #tpu.memory_space<vmem>>) attributes {dimension_semantics = [#tpu.dimension_semantics<arbitrary>], iteration_bounds = array<i64: 2>, scalar_prefetch = 0 : i64, scratch_operands = 2 : i64, tpu.core_type = #tpu.core_type<tc>, window_params = [{transform_indices = @transform_0, window_bounds = array<i64: 4, 2, 32>}, {pipeline_mode = #tpu.pipeline_mode<synchronous>, transform_indices = @transform_1, window_bounds = array<i64: 2, 32>}, {pipeline_mode = #tpu.pipeline_mode<synchronous>, transform_indices = @transform_2, window_bounds = array<i64: 32, 32>}, {pipeline_mode = #tpu.pipeline_mode<synchronous>, transform_indices = @transform_3, window_bounds = array<i64: 1, 32>}, {pipeline_mode = #tpu.pipeline_mode<synchronous>, transform_indices = @transform_4, window_bounds = array<i64: 32, 128>}, {pipeline_mode = #tpu.pipeline_mode<synchronous>, transform_indices = @transform_5, window_bounds = array<i64: 1, 128>}, {transform_indices = @transform_6, window_bounds = array<i64: 8, 128>}, {pipeline_mode = #tpu.pipeline_mode<synchronous>, transform_indices = @transform_7, window_bounds = array<i64: 1, 2, 32>}]} {
    %c0_i32 = arith.constant 0 : i32
    %0 = arith.cmpi eq, %arg0, %c0_i32 : i32
    %1 = arith.extui %0 : i1 to i32
    %c0_i32_0 = arith.constant 0 : i32
    %2 = arith.cmpi ne, %1, %c0_i32_0 : i32
    scf.if %2 {
      %c0_36 = arith.constant 0 : index
      %c0_37 = arith.constant 0 : index
      %52 = vector.load %arg2[%c0_36, %c0_37] : memref<2x32xf32, #tpu.memory_space<vmem>>, vector<2x32xf32>
      %c0_38 = arith.constant 0 : index
      %c0_39 = arith.constant 0 : index
      %53 = vector.load %arg9[%c0_38, %c0_39] : memref<2x32xf32, #tpu.memory_space<vmem>>, vector<2x32xf32>
      tpu.vector_store %arg9[%c0_38, %c0_39], %52 {strides = array<i32>} : memref<2x32xf32, #tpu.memory_space<vmem>>, vector<2x32xf32>,
    } else {
    }
    %c0 = arith.constant 0 : index
    %c0_1 = arith.constant 0 : index
    %3 = vector.load %arg3[%c0, %c0_1] : memref<32x32xbf16, #tpu.memory_space<vmem>>, vector<32x32xbf16>
    %c0_2 = arith.constant 0 : index
    %c0_3 = arith.constant 0 : index
    %4 = vector.load %arg4[%c0_2, %c0_3] : memref<1x32xf32, #tpu.memory_space<vmem>>, vector<1x32xf32>
    %5 = vector.shape_cast %4 : vector<1x32xf32> to vector<1x32xf32>
    %6 = vector.broadcast %5 : vector<1x32xf32> to vector<2x32xf32>
    %c0_4 = arith.constant 0 : index
    %c0_5 = arith.constant 0 : index
    %7 = vector.load %arg9[%c0_4, %c0_5] : memref<2x32xf32, #tpu.memory_space<vmem>>, vector<2x32xf32>
    %c0_6 = arith.constant 0 : index
    %c0_7 = arith.constant 0 : index
    %c0_8 = arith.constant 0 : index
    %8 = vector.load %arg1[%c0_6, %c0_7, %c0_8] : memref<4x2x32xf32, #tpu.memory_space<vmem>>, vector<1x2x32xf32>
    %9 = vector.shape_cast %8 : vector<1x2x32xf32> to vector<2x32xf32>
    %10 = arith.addf %9, %6 : vector<2x32xf32>
    %11 = arith.truncf %7 : vector<2x32xf32> to vector<2x32xbf16>
    %cst = arith.constant dense<0.000000e+00> : vector<2x32xf32>
    %12 = tpu.matmul %11, %3, %cst {dimension_numbers = #tpu.dot_dimension_numbers<[1], [0], [0], [1], [0, 0, 1, 1], [], []>} : vector<2x32xbf16>, vector<32x32xbf16>, vector<2x32xf32> -> vector<2x32xf32>
    %13 = arith.addf %10, %12 : vector<2x32xf32>
    %14 = math.tanh %13 : vector<2x32xf32>
    %c0_9 = arith.constant 0 : index
    %c0_10 = arith.constant 0 : index
    %15 = vector.load %arg10[%c0_9, %c0_10] : memref<8x32xf32, #tpu.memory_space<vmem>>, vector<2x32xf32>
    tpu.vector_store %arg10[%c0_9, %c0_10], %14 {strides = array<i32>} : memref<8x32xf32, #tpu.memory_space<vmem>>, vector<2x32xf32>,
    %c1 = arith.constant 1 : index
    %c0_11 = arith.constant 0 : index
    %c0_12 = arith.constant 0 : index
    %16 = vector.load %arg1[%c1, %c0_11, %c0_12] : memref<4x2x32xf32, #tpu.memory_space<vmem>>, vector<1x2x32xf32>
    %17 = vector.shape_cast %16 : vector<1x2x32xf32> to vector<2x32xf32>
    %18 = arith.addf %17, %6 : vector<2x32xf32>
    %19 = arith.truncf %14 : vector<2x32xf32> to vector<2x32xbf16>
    %cst_13 = arith.constant dense<0.000000e+00> : vector<2x32xf32>
    %20 = tpu.matmul %19, %3, %cst_13 {dimension_numbers = #tpu.dot_dimension_numbers<[1], [0], [0], [1], [0, 0, 1, 1], [], []>} : vector<2x32xbf16>, vector<32x32xbf16>, vector<2x32xf32> -> vector<2x32xf32>
    %21 = arith.addf %18, %20 : vector<2x32xf32>
    %22 = math.tanh %21 : vector<2x32xf32>
    %c2 = arith.constant 2 : index
    %c0_14 = arith.constant 0 : index
    %23 = vector.load %arg10[%c2, %c0_14] : memref<8x32xf32, #tpu.memory_space<vmem>>, vector<2x32xf32>
    tpu.vector_store %arg10[%c2, %c0_14], %22 {strides = array<i32>} : memref<8x32xf32, #tpu.memory_space<vmem>>, vector<2x32xf32>,
    %c2_15 = arith.constant 2 : index
    %c0_16 = arith.constant 0 : index
    %c0_17 = arith.constant 0 : index
    %24 = vector.load %arg1[%c2_15, %c0_16, %c0_17] : memref<4x2x32xf32, #tpu.memory_space<vmem>>, vector<1x2x32xf32>
    %25 = vector.shape_cast %24 : vector<1x2x32xf32> to vector<2x32xf32>
    %26 = arith.addf %25, %6 : vector<2x32xf32>
    %27 = arith.truncf %22 : vector<2x32xf32> to vector<2x32xbf16>
    %cst_18 = arith.constant dense<0.000000e+00> : vector<2x32xf32>
    %28 = tpu.matmul %27, %3, %cst_18 {dimension_numbers = #tpu.dot_dimension_numbers<[1], [0], [0], [1], [0, 0, 1, 1], [], []>} : vector<2x32xbf16>, vector<32x32xbf16>, vector<2x32xf32> -> vector<2x32xf32>
    %29 = arith.addf %26, %28 : vector<2x32xf32>
    %30 = math.tanh %29 : vector<2x32xf32>
    %c4 = arith.constant 4 : index
    %c0_19 = arith.constant 0 : index
    %31 = vector.load %arg10[%c4, %c0_19] : memref<8x32xf32, #tpu.memory_space<vmem>>, vector<2x32xf32>
    tpu.vector_store %arg10[%c4, %c0_19], %30 {strides = array<i32>} : memref<8x32xf32, #tpu.memory_space<vmem>>, vector<2x32xf32>,
    %c3 = arith.constant 3 : index
    %c0_20 = arith.constant 0 : index
    %c0_21 = arith.constant 0 : index
    %32 = vector.load %arg1[%c3, %c0_20, %c0_21] : memref<4x2x32xf32, #tpu.memory_space<vmem>>, vector<1x2x32xf32>
    %33 = vector.shape_cast %32 : vector<1x2x32xf32> to vector<2x32xf32>
    %34 = arith.addf %33, %6 : vector<2x32xf32>
    %35 = arith.truncf %30 : vector<2x32xf32> to vector<2x32xbf16>
    %cst_22 = arith.constant dense<0.000000e+00> : vector<2x32xf32>
    %36 = tpu.matmul %35, %3, %cst_22 {dimension_numbers = #tpu.dot_dimension_numbers<[1], [0], [0], [1], [0, 0, 1, 1], [], []>} : vector<2x32xbf16>, vector<32x32xbf16>, vector<2x32xf32> -> vector<2x32xf32>
    %37 = arith.addf %34, %36 : vector<2x32xf32>
    %38 = math.tanh %37 : vector<2x32xf32>
    %c6 = arith.constant 6 : index
    %c0_23 = arith.constant 0 : index
    %39 = vector.load %arg10[%c6, %c0_23] : memref<8x32xf32, #tpu.memory_space<vmem>>, vector<2x32xf32>
    tpu.vector_store %arg10[%c6, %c0_23], %38 {strides = array<i32>} : memref<8x32xf32, #tpu.memory_space<vmem>>, vector<2x32xf32>,
    %c0_24 = arith.constant 0 : index
    %c0_25 = arith.constant 0 : index
    %40 = vector.load %arg9[%c0_24, %c0_25] : memref<2x32xf32, #tpu.memory_space<vmem>>, vector<2x32xf32>
    tpu.vector_store %arg9[%c0_24, %c0_25], %38 {strides = array<i32>} : memref<2x32xf32, #tpu.memory_space<vmem>>, vector<2x32xf32>,
    %c0_26 = arith.constant 0 : index
    %c0_27 = arith.constant 0 : index
    %41 = vector.load %arg10[%c0_26, %c0_27] : memref<8x32xf32, #tpu.memory_space<vmem>>, vector<8x32xf32>
    %42 = arith.truncf %41 : vector<8x32xf32> to vector<8x32xbf16>
    %c0_28 = arith.constant 0 : index
    %c0_29 = arith.constant 0 : index
    %43 = vector.load %arg5[%c0_28, %c0_29] : memref<32x128xbf16, #tpu.memory_space<vmem>>, vector<32x128xbf16>
    %cst_30 = arith.constant dense<0.000000e+00> : vector<8x128xf32>
    %44 = tpu.matmul %42, %43, %cst_30 {dimension_numbers = #tpu.dot_dimension_numbers<[1], [0], [0], [1], [0, 0, 1, 1], [], []>} : vector<8x32xbf16>, vector<32x128xbf16>, vector<8x128xf32> -> vector<8x128xf32>
    %c0_31 = arith.constant 0 : index
    %c0_32 = arith.constant 0 : index
    %45 = vector.load %arg6[%c0_31, %c0_32] : memref<1x128xf32, #tpu.memory_space<vmem>>, vector<1x128xf32>
    %46 = vector.broadcast %45 : vector<1x128xf32> to vector<8x128xf32>
    %47 = arith.addf %44, %46 : vector<8x128xf32>
    %c0_33 = arith.constant 0 : index
    %c0_34 = arith.constant 0 : index
    %48 = vector.load %arg7[%c0_33, %c0_34] : memref<8x128xf32, #tpu.memory_space<vmem>>, vector<8x128xf32>
    tpu.vector_store %arg7[%c0_33, %c0_34], %47 {strides = array<i32>} : memref<8x128xf32, #tpu.memory_space<vmem>>, vector<8x128xf32>,
    %c1_i32 = arith.constant 1 : i32
    %49 = arith.cmpi eq, %arg0, %c1_i32 : i32
    %50 = arith.extui %49 : i1 to i32
    %c0_i32_35 = arith.constant 0 : i32
    %51 = arith.cmpi ne, %50, %c0_i32_35 : i32
    scf.if %51 {
      %c0_36 = arith.constant 0 : index
      %c0_37 = arith.constant 0 : index
      %c0_38 = arith.constant 0 : index
      %52 = vector.load %arg8[%c0_36, %c0_37, %c0_38] : memref<1x2x32xf32, #tpu.memory_space<vmem>>, vector<1x2x32xf32>
      %53 = vector.shape_cast %52 : vector<1x2x32xf32> to vector<2x32xf32>
      %54 = vector.shape_cast %38 : vector<2x32xf32> to vector<1x2x32xf32>
      tpu.vector_store %arg8[%c0_36, %c0_37, %c0_38], %54 {strides = array<i32>} : memref<1x2x32xf32, #tpu.memory_space<vmem>>, vector<1x2x32xf32>,
    } else {
    }
    return
  }
  func.func @transform_0(%arg0: i32) -> (i32, i32, i32) {
    %c0_i32 = arith.constant 0 : i32
    %c0_i32_0 = arith.constant 0 : i32
    %c0_i32_1 = arith.constant 0 : i32
    return %arg0, %c0_i32, %c0_i32_0 : i32, i32, i32
  }
  func.func @transform_1(%arg0: i32) -> (i32, i32) {
    %c0_i32 = arith.constant 0 : i32
    %c0_i32_0 = arith.constant 0 : i32
    %c0_i32_1 = arith.constant 0 : i32
    return %c0_i32, %c0_i32_0 : i32, i32
  }
  func.func @transform_2(%arg0: i32) -> (i32, i32) {
    %c0_i32 = arith.constant 0 : i32
    %c0_i32_0 = arith.constant 0 : i32
    %c0_i32_1 = arith.constant 0 : i32
    return %c0_i32, %c0_i32_0 : i32, i32
  }
  func.func @transform_3(%arg0: i32) -> (i32, i32) {
    %c0_i32 = arith.constant 0 : i32
    %c0_i32_0 = arith.constant 0 : i32
    %c0_i32_1 = arith.constant 0 : i32
    return %c0_i32, %c0_i32_0 : i32, i32
  }
  func.func @transform_4(%arg0: i32) -> (i32, i32) {
    %c0_i32 = arith.constant 0 : i32
    %c0_i32_0 = arith.constant 0 : i32
    %c0_i32_1 = arith.constant 0 : i32
    return %c0_i32, %c0_i32_0 : i32, i32
  }
  func.func @transform_5(%arg0: i32) -> (i32, i32) {
    %c0_i32 = arith.constant 0 : i32
    %c0_i32_0 = arith.constant 0 : i32
    %c0_i32_1 = arith.constant 0 : i32
    return %c0_i32, %c0_i32_0 : i32, i32
  }
  func.func @transform_6(%arg0: i32) -> (i32, i32) {
    %c0_i32 = arith.constant 0 : i32
    %c0_i32_0 = arith.constant 0 : i32
    return %arg0, %c0_i32 : i32, i32
  }
  func.func @transform_7(%arg0: i32) -> (i32, i32, i32) {
    %c0_i32 = arith.constant 0 : i32
    %c0_i32_0 = arith.constant 0 : i32
    %c0_i32_1 = arith.constant 0 : i32
    %c0_i32_2 = arith.constant 0 : i32
    return %c0_i32, %c0_i32_0, %c0_i32_1 : i32, i32, i32
  }
}

</mosaic_0001>

<bundles_post_ra>
// kernel: tpu_custom_call.1
= control target key start
LH: loop header
LB: loop body
LE: loop exit
PB: predicated region body
PF: predicated region fallthrough
CT: control target
= control target key end

     0   :  { %s1279_s0 = inlined_call_operand.hbm [shape: f32[8,2,32], index: 0, kind: input, shape index: {}]   ;;  %s1280_s1 = inlined_call_operand.hbm [shape: f32[2,32], index: 1, kind: input, shape index: {}]   ;;  %s1281_s2 = inlined_call_operand.hbm [shape: bf16[32,32], index: 2, kind: input, shape index: {}]   ;;  %s1282_s3 = inlined_call_operand.vmem [shape: f32[1,32], index: 3, kind: input, shape index: {}]   ;;  %s1283_s4 = inlined_call_operand.hbm [shape: bf16[32,128], index: 4, kind: input, shape index: {}]   ;;  %s1284_s5 = inlined_call_operand.vmem [shape: f32[1,128], index: 5, kind: input, shape index: {}]   ;;  %s1285_s6 = inlined_call_operand.hbm [shape: f32[16,128], index: 6, kind: output, shape index: {0}]   ;;  %s1286_s7 = inlined_call_operand.hbm [shape: f32[1,2,32], index: 7, kind: output, shape index: {1}]  }
   0x1   :  { %1288 = sst [smem:[#allocation20_spill]] %s1279_s0 }
   0x2   :  { %1289 = sst [smem:[#allocation21_spill]] %s1280_s1 }
   0x3   :  { %13 = vsyncpa [#allocation5], 0 }
   0x4   :  { %15 = vsyncpa [#allocation5 + $0x1], 0 }
   0x5   :  { %16 = vsyncpa [#allocation8], 0 }
   0x6   :  { %17 = vsyncpa [#allocation11], 0 }
   0x7   :  { %18 = vsyncpa [#allocation6], 0 }
   0x8   :  { %20 = vsyncpa [#allocation6 + $0x1], 0 }
   0x9   :  { %21 = vsyncpa [#allocation14], 0  ;;  %s1079_s24 = smov 0   ;;  %s1081_s25 = smov 0  }
   0xa   :  { %s1083_s26 = smov 0   ;;  %s1085_s27 = smov 0  }
   0xb LB: > { %s1100_s28 = sadd.s32 4294967295, %s1029_s27   ;;  %s653_s29 = sadd.s32 4294967294, %s1029_s27   ;;  %s1029_s27 = sphi %s1085_s27, %s1306_s27   ;;  %s1025_s26 = sphi %s1083_s26, %s1305_s26   ;;  %s1021_s25 = sphi %s1081_s25, %s1304_s25   ;;  %s1017_s24 = sphi %s1079_s24, %s1303_s24  }
   0xc   : > { %p47_p0 = scmp.ne.s32.totalorder %s1021_s25, %s1017_s24  ;;  %p48_p1 = scmp.eq.s32.totalorder %s1100_s28, 0 }
   0xd   : > { %p1287_p2 = scmp.eq.s32.totalorder %s1100_s28, 1  ;;  %p182_p3 = scmp.eq.s32.totalorder %s653_s29, 1 }
   0xe   : > { %p1109_p4 = por %p48_p1, %p47_p0  ;;  %p654_p5 = scmp.ge.s32.totalorder %s1029_s27, 1 }
   0xf   : > { %p1114_p6 = por %p182_p3, %p47_p0  ;;  %p210_p7 = scmp.lt.s32.totalorder %s1029_s27, 3 }
  0x10   : > { %s1292_s1 = sld [smem:[#allocation21_spill]]  ;;  %s1031_s13 = smov [#allocation7]  }
  0x11   : > { %p1123_p9 = pnand %p654_p5, %p210_p7  ;;  %s224_s14 = sshll.u32 %s1031_s13, 4  ;;  %s225_s14 = int_to_ptr.vmem [resolvable:$true] %s224_s14 }
  0x12   : > { %s233_s17 = sshll.u32 %s1281_s2, 4  ;;  %s1032_s19 = smov [#allocation9]   ;;  %s234_s17 = int_to_ptr.hbm [resolvable:$true] %s233_s17 }
  0x13   : > { %p725_p11 = pneg %p1123_p9  ;;  %s235_s20 = sshll.u32 %s1032_s19, 4  ;;  %s236_s20 = int_to_ptr.vmem [resolvable:$true] %s235_s20 }
  0x14   : > { %s1033_s21 = smov 64   ;;  %s1034_s22 = smov 4  }
  0x15   : > { %p1135_p12 = pnand %p725_p11, %p48_p1  ;;  %s250_s9 = sshll.u32 %s1283_s4, 4  ;;  %s251_s9 = int_to_ptr.hbm [resolvable:$true] %s250_s9 }
  0x16   : > { %s222_s11 = sshll.u32 %s1292_s1, 4  ;;  %s1035_s10 = smov [#allocation10]   ;;  %s223_s11 = int_to_ptr.hbm [resolvable:$true] %s222_s11 }
  0x17   : > { %728 = dma.hbm_to_vmem [thread:$0]  (!%p1135_p12), %s223_s11, 32, %s225_s14, [#allocation8]  }
  0x18   : > { %731 = dma.hbm_to_vmem [thread:$0]  (!%p1135_p12), %s234_s17, 256, %s236_s20, [#allocation8], %s1033_s21, %s1033_s21, %s1034_s22  }
  0x19   : > { %s252_s13 = sshll.u32 %s1035_s10, 4  ;;  %s1149_s11 = sadd.s32 1, %s1029_s27   ;;  %s253_s13 = int_to_ptr.vmem [resolvable:$true] %s252_s13 }
  0x1a   : > { %734 = dma.hbm_to_vmem [thread:$0]  (!%p1135_p12), %s251_s9, 256, %s253_s13, [#allocation11], %s1033_s21, %s1033_s21, %s1034_s22  }
  0x1b   : > { %s31_s14 = ssub.s32 %s1029_s27, %s1149_s11  ;;  %s34_s15 = sadd.s32 1, %s1025_s26 }
  0x1c   : > { %p32_p13 = scmp.eq.s32.totalorder %s31_s14, 0  ;;  %p41_p0 = scmp.ne.s32.totalorder %s1025_s26, %s1021_s25 }
  0x1d   : > { %p42_p3 = scmp.eq.s32.totalorder %s1029_s27, 0  ;;  %p746_p5 = scmp.lt.s32.totalorder %s1029_s27, 2 }
  0x1e   : > { %s1159_s16 = scalar_select %p32_p13, %s1025_s26, %s34_s15  }
  0x1f   : > { %p43_p7 = por %p42_p3, %p41_p0  ;;  %p1163_p11 = por %p1287_p2, %p41_p0 }
  0x20   : > { %s269_s18 = sand.u32 1, %s1025_s26   ;;  %s700_s19 = sshll.u32 %s1029_s27, 3 }
  0x21   : > { %s659_s20 = sshll.u32 %s269_s18, 3  ;;  %s1296_s0 = sld [smem:[#allocation20_spill]] }
  0x22   : > { %s273_s9 = scalar_lea.vmem [#allocation4], %s659_s20  ;;  %p1174_p12 = pnand %p746_p5, %p43_p7 }
  0x23   : > { %s281_s10 = sshll.u32 %s273_s9, 4  ;;  %s270_s14 = scalar_lea.sflag [#allocation5], %s269_s18  ;;  %s282_s10 = int_to_ptr.vmem [resolvable:$true] %s281_s10 }
  0x24   : > { %p897_p0 = pneg %p1174_p12 }
  0x27   : > { %s278_s23 = scalar_lea.hbm %s1296_s0, %s700_s19  ;;  %s900_s21 = scalar_lea.hbm %s1296_s0, 16 }
  0x28   : > { %s279_s29 = sshll.u32 %s278_s23, 4  ;;  %s280_s29 = int_to_ptr.hbm [resolvable:$true] %s279_s29 }
  0x29   : > { %s893_s15 = sshra.s32 %s280_s29, 4  ;;  %s894_s15 = int_to_ptr.hbm [resolvable:$true] %s893_s15 }
  0x2a   : > { %s895_s1 = scalar_lea.hbm %s894_s15, 8  ;;  %p901_p5 = scmp.lt.s32.totalorder %s894_s15, %s1296_s0 }
  0x2b   : > { %p896_p13 = scmp.ne.s32.totalorder %s894_s15, %s895_s1  ;;  %p902_p7 = scmp.lt.s32.totalorder %s900_s21, %s895_s1 }
  0x2d   : > { %p898_p3 = pnand %p897_p0, %p896_p13  ;;  %p903_p2 = por %p902_p7, %p901_p5 }
  0x2f   : > { %p899_p10 = pneg %p898_p3 }
  0x31   : > { %p904_p8 = pnand %p903_p2, %p899_p10 }
  0x33   : > { %907 = shalt.err (!%p904_p8)
}
  0x34   : > { %s1036_s18 = smov 32   ;;  %s1037_s9 = smov 2  }
  0x35   : > { %738 = dma.hbm_to_vmem [thread:$0]  (!%p1174_p12), %s280_s29, 128, %s282_s10, %s270_s14, %s1036_s18, %s1036_s18, %s1037_s9  }
  0x36   : > { %293 = sbr.rel (%p1123_p9) target bundleno = 808 (0x328), region = 44  ;;  %s1191_s19 = sand.u32 (!%p1123_p9), 1, %s1021_s25  }
  0x37   : > { %s663_s20 = sshll.u32 (!%p1123_p9), %s1191_s19, 3  ;;  %s296_s15 = scalar_lea.sflag (!%p1123_p9), [#allocation5], %s1191_s19 }
  0x38   : > { %s1195_s1 = scalar_lea.vmem (!%p1123_p9), [#allocation4], %s663_s20 }
  0x3b   : > { %996 = dma.done.wait (%p1109_p4), %s296_s15, 128  }
  0x3c   : > { %998 = vsyncadd (%p1109_p4), %s296_s15, 4294967168 }
  0x3d   : > { %1000 = dma.done.wait (%p48_p1), [#allocation8], 288  }
  0x3e   : > { %1002 = vsyncadd (%p48_p1), [#allocation8], 4294967008 }
  0x3f   : > { %1004 = dma.done.wait (%p48_p1), [#allocation11], 256  }
  0x40   : > { %1006 = vsyncadd (%p48_p1), [#allocation11], 4294967040  ;;  %s1209_s12 = scalar_lea.vmem [#allocation12], %s663_s20  ;;  %p1298_p2 = scmp.ne.s32.totalorder %s1100_s28, 0 }
  0x42   : > { %351 = sbr.rel (%p1298_p2) target bundleno = 73 (0x49), region = 64 }
  0x47   : > { %v352_v0 = vld [vmem:[#allocation7] sm:$0x3]  ;;  %vm353_vm0 = vcmask 254976  }
  0x48   : > { %354 = vst.msk [vmem:[#allocation2] sm:$0x3] %vm353_vm0, %v352_v0 }
  0x49 PF: > { %v702_v1 = vld [vmem:[#allocation9 + $0x8] sm:$0xff]  ;;  %v701_v2 = vld [vmem:[#allocation9] sm:$0xff]  ;;  %vm379_vm1 = vcmask 261120   ;;  %vm398_vm2 = vcmask 254976   ;;  %v678_v13 = vld [vmem:[%s1195_s1 + $0x2] sm:$0x3] }
  0x4a   : > { %389 = vmatpush.bf16.msra.mxu0 %v702_v1  ;;  %413 = vmatpush.bf16.msra.mxu1 %v702_v1  ;;  %v793_v5 = vld [vmem:[%s1282_s3] ss:$0 sm:$0xff]  ;;  %v364_v6 = vld [vmem:[%s1195_s1] sm:$0x3]  ;;  %v680_v20 = vld [vmem:[%s1195_s1 + $0x4] sm:$0x3] }
  0x4b   : > { %436 = vmatpush.bf16.msra.mxu2 %v702_v1  ;;  %459 = vmatpush.bf16.msra.mxu3 %v702_v1  ;;  %v365_v7 = vadd.f32 %v793_v5, %v364_v6  ;;  %v402_v14 = vadd.f32 %v793_v5, %v678_v13  ;;  %v425_v21 = vadd.f32 %v793_v5, %v680_v20  ;;  %v704_v27 = vld [vmem:[#allocation10 + $0x8] sm:$0xff]  ;;  %v703_v28 = vld [vmem:[#allocation10] sm:$0xff]  ;;  %v794_v37 = vld [vmem:[%s1284_s5] ss:$0 sm:$0xff]  ;;  %p693_p1 = scmp.ne.s32.totalorder %s1100_s28, 1 }
  0x4c   : > { %v682_v29 = vld [vmem:[%s1195_s1 + $0x6] sm:$0x3] }
  0x4d   : > { %v448_v30 = vadd.f32 %v793_v5, %v682_v29 }
  0x4e   : > { %390 = vmatpush.bf16.msra.mxu0 %v701_v2  ;;  %414 = vmatpush.bf16.msra.mxu1 %v701_v2 }
  0x4f   : > { %v363_v3 = vld [vmem:[#allocation2] sm:$0x3]  ;;  %437 = vmatpush.bf16.msra.mxu2 %v701_v2  ;;  %460 = vmatpush.bf16.msra.mxu3 %v701_v2 }
  0x50   : > { %v366_v4 = vpack.c.bf16 %v363_v3, %v363_v3 }
  0x52   : > { %677 = vmatmul.msk.bf16.vlgmr.msra.gmra.mxu0 %vm379_vm1, %v366_v4 }
  0x53   : > { %501 = vmatpush.bf16.msrb.mxu0 %v704_v27 }
  0x57   : > { %502 = vmatpush.bf16.msrb.mxu0 %v703_v28 }
  0xcf   : > { %v392_v8 = vpop.f32.mrf.mxu0 }
  0xd0   : > { %v396_v9 = vadd.f32 %v392_v8, %v365_v7 }
  0xd2   : > { %795 = vtanh.f32 %v396_v9 }
  0xd7   : > { %v394_v10 = vpop.f32.mrf.mxu0 }
  0xd8   : > { %v796_v11 = vpop.eup %795 }
  0xd9   : > { %399 = vst.msk [vmem:[#allocation3] sm:$0x3] %vm398_vm2, %v796_v11  ;;  %v403_v12 = vpack.c.bf16 %v796_v11, %v796_v11 }
  0xdb   : > { %679 = vmatmul.msk.bf16.vlgmr.msra.gmra.mxu1 %vm379_vm1, %v403_v12 }
 0x158   : > { %v416_v15 = vpop.f32.mrf.mxu1 }
 0x159   : > { %v420_v16 = vadd.f32 %v416_v15, %v402_v14 }
 0x15b   : > { %797 = vtanh.f32 %v420_v16 }
 0x160   : > { %v418_v17 = vpop.f32.mrf.mxu1 }
 0x161   : > { %v798_v18 = vpop.eup %797 }
 0x162   : > { %422 = vst.msk [vmem:[#allocation3 + $0x2] sm:$0x3] %vm398_vm2, %v798_v18  ;;  %v426_v19 = vpack.c.bf16 %v798_v18, %v798_v18 }
 0x164   : > { %681 = vmatmul.msk.bf16.vlgmr.msra.gmra.mxu2 %vm379_vm1, %v426_v19 }
 0x1e7   : > { %v439_v22 = vpop.f32.mrf.mxu2 }
 0x1e8   : > { %v443_v23 = vadd.f32 %v439_v22, %v425_v21 }
 0x1ea   : > { %799 = vtanh.f32 %v443_v23 }
 0x1ef   : > { %v441_v24 = vpop.f32.mrf.mxu2 }
 0x1f0   : > { %v800_v25 = vpop.eup %799 }
 0x1f1   : > { %445 = vst.msk [vmem:[#allocation3 + $0x4] sm:$0x3] %vm398_vm2, %v800_v25  ;;  %v449_v26 = vpack.c.bf16 %v800_v25, %v800_v25 }
 0x1f3   : > { %683 = vmatmul.msk.bf16.vlgmr.msra.gmra.mxu3 %vm379_vm1, %v449_v26 }
 0x276   : > { %v462_v31 = vpop.f32.mrf.mxu3 }
 0x277   : > { %v466_v32 = vadd.f32 %v462_v31, %v448_v30 }
 0x279   : > { %801 = vtanh.f32 %v466_v32 }
 0x27e   : > { %v464_v33 = vpop.f32.mrf.mxu3 }
 0x27f   : > { %v802_v34 = vpop.eup %801 }
 0x280   : > { %468 = vst.msk [vmem:[#allocation3 + $0x6] sm:$0x3] %vm398_vm2, %v802_v34 }
 0x281   : > { %469 = vst.msk [vmem:[#allocation2] sm:$0x3] %vm398_vm2, %v802_v34 }
 0x287   : > { %v470_v35 = vld [vmem:[#allocation3] sm:$0xff] }
 0x288   : > { %v471_v36 = vpack.c.bf16 %v470_v35, %v470_v35 }
 0x28a   : > { %692 = vmatmul.msk.bf16.vlgmr.msrb.gmra.mxu0 %vm379_vm1, %v471_v36 }
 0x307   : > { %v504_v38 = vpop.f32.mrf.mxu0 }
 0x308   : > { %v505_v39 = vadd.f32 %v794_v37, %v504_v38 }
 0x30a   : > { %508 = vst [vmem:[%s1209_s12] sm:$0xff] %v505_v39 }
 0x30b   : > { %512 = sbr.rel (%p693_p1) target bundleno = 785 (0x311), region = 68 }
 0x30f   : > { %v506_v40 = vpop.f32.mrf.mxu0 }
 0x310   : > { %513 = vst.msk [vmem:[#allocation13] sm:$0x3] %vm398_vm2, %v802_v34 }
 0x311 PF: > { %s695_s14 = sshll.u32 %s1100_s28, 3  ;;  %s527_s18 = sshll.u32 %s1209_s12, 4  ;;  %s528_s18 = int_to_ptr.vmem [resolvable:$true] %s527_s18 }
 0x312   : > { %s525_s23 = scalar_lea.hbm %s1285_s6, %s695_s14  ;;  %s515_s20 = scalar_lea.sflag [#allocation6], %s1191_s19 }
 0x313   : > { %s529_s9 = sshll.u32 %s525_s23, 4  ;;  %s943_s10 = scalar_lea.hbm %s1285_s6, 16  ;;  %s530_s9 = int_to_ptr.hbm [resolvable:$true] %s529_s9 }
 0x314   : > { %s937_s15 = sshra.s32 %s530_s9, 4  ;;  %s938_s15 = int_to_ptr.hbm [resolvable:$true] %s937_s15 }
 0x315   : > { %s939_s1 = scalar_lea.hbm %s938_s15, 8  ;;  %p944_p10 = scmp.lt.s32.totalorder %s938_s15, %s1285_s6 }
 0x316   : > { %p940_p4 = scmp.ne.s32.totalorder %s938_s15, %s939_s1  ;;  %p945_p12 = scmp.lt.s32.totalorder %s943_s10, %s939_s1 }
 0x318   : > { %p941_p8 = pnand %p940_p4, %p1163_p11  ;;  %p946_p13 = por %p945_p12, %p944_p10 }
 0x31a   : > { %p942_p9 = pneg %p941_p8 }
 0x31c   : > { %p947_p0 = pnand %p946_p13, %p942_p9 }
 0x31e   : > { %950 = shalt.err (!%p947_p0)
}
 0x31f   : > { %719 = dma.vmem_to_hbm [thread:$0]  (%p1163_p11), %s528_s18, 128, %s530_s9, %s515_s20  }
 0x320   : > { %s1038_s19 = smov [#allocation13]   ;;  %s541_s22 = sshll.u32 %s1286_s7, 4  ;;  %s542_s22 = int_to_ptr.hbm [resolvable:$true] %s541_s22 }
 0x321   : > { %s539_s12 = sshll.u32 %s1038_s19, 4  ;;  %p1299_p3 = scmp.eq.s32.totalorder %s1100_s28, 1  ;;  %s540_s12 = int_to_ptr.vmem [resolvable:$true] %s539_s12 }
 0x323   : > { %721 = dma.vmem_to_hbm [thread:$0]  (%p1299_p3), %s540_s12, 32, %s542_s22, [#allocation14]  }
 0x324   : > { %p1300_p5 = pmov %p1299_p3 }
 0x325   : > { %p1301_p7 = pmov %p1299_p3 }
 0x326   : > { %1008 = dma.done.wait (%p1300_p5), [#allocation14], 32  }
 0x327   : > { %1010 = vsyncadd (%p1301_p7), [#allocation14], 4294967264 }
 0x328 PF: > { %s558_s0 = sand.u32 1, %s1017_s24   ;;  %p1302_p11 = scmp.ge.s32.totalorder %s1029_s27, 2 }
 0x329   : > { %s559_s17 = scalar_lea.sflag [#allocation6], %s558_s0 }
 0x32a   : > { %p740_p2 = pnand %p1302_p11, %p1114_p6 }
 0x32c   : > { %p741_p1 = pneg %p740_p2 }
 0x32e   : > { %1012 = dma.done.wait (%p741_p1), %s559_s17, 128  }
 0x32f   : > { %1014 = vsyncadd (%p741_p1), %s559_s17, 4294967168  ;;  %p24_p4 = scmp.ge.s32.totalorder %s1149_s11, 4   ;;  %s1303_s24 = smov %s1021_s25 }
 0x330   : > { %s1304_s25 = smov %s1025_s26  ;;  %s1305_s26 = smov %s1159_s16 }
 0x331   : > { %s1306_s27 = smov %s1149_s11  ;;  %26 = sbr.rel (!%p24_p4) target bundleno = 11 (0xb), region = 120 }
 0x336   :  { %565 = vsyncpa [#allocation5], 1 }
 0x337   :  { %567 = vsyncpa [#allocation5 + $0x1], 1 }
 0x338   :  { %568 = vsyncpa [#allocation8], 1 }
 0x339   :  { %569 = vsyncpa [#allocation11], 1 }
 0x33a   :  { %570 = vsyncpa [#allocation6], 1 }
 0x33b   :  { %572 = vsyncpa [#allocation6 + $0x1], 1 }
 0x33c   :  { %573 = vsyncpa [#allocation14], 1 }

</bundles_post_ra>
